<compile_context>
chip_gen: v6e
topology: v6e:2x2x1
jax: 0.10.0
libtpu: 0.0.40
codegen_flags: <defaults>
</compile_context>

<pallas_src>
import functools
import math

import jax
import jax.numpy as jnp
import numpy as np
from jax.experimental import pallas as pl
from jax.experimental.pallas import tpu as pltpu


LN_EPS = 1e-6


def _layer_norm(x, gamma, beta):
    # PyTorch nn.LayerNorm: biased variance over the last dim, eps inside rsqrt.
    mu = jnp.mean(x, axis=-1, keepdims=True)
    var = jnp.mean((x - mu) * (x - mu), axis=-1, keepdims=True)
    return (x - mu) * jax.lax.rsqrt(var + LN_EPS) * gamma + beta


def bert4rec_block_kernel(
    enc_ref, kmask_ref,
    wqkv_ref, wo_ref,
    ln1g_ref, ln1b_ref,
    w1_ref, b1_ref, w2_ref, b2_ref,
    ln2g_ref, ln2b_ref,
    out_ref, *attn_refs,
    matmul_dtype, exact_gelu,
):
    Bb, S, H = enc_ref.shape
    f32 = jnp.float32

    x = enc_ref[...]                           # (Bb, S, H) f32
    xf = x.reshape(Bb * S, H)                  # flatten rows -> fill MXU sublanes
    xf_mm = xf.astype(matmul_dtype)            # cast ONCE (residual path stays f32)

    # ---- multi-head attention (num_heads == 1) ----
    # Fused QKV projection; 1/sqrt(H) already folded into the Q columns on the host.
    qkv = jnp.dot(xf_mm, wqkv_ref[...], preferred_element_type=f32)   # (Bb*S, 3H)
    q = qkv[:, :H].reshape(Bb, S, H)
    k = qkv[:, H:2 * H].reshape(Bb, S, H)
    v = qkv[:, 2 * H:].reshape(Bb, S, H)

    scores = jnp.einsum("bqd,bkd->bqk",
                        q.astype(matmul_dtype), k.astype(matmul_dtype),
                        preferred_element_type=f32)                   # (Bb, S, S)

    # key-padding predicate rebuilt in-kernel from the compact (Bb, 1, S) mask
    key_ok = kmask_ref[...]                                           # (Bb, 1, S) i32
    scores = jnp.where(key_ok == 0, jnp.float32(-1e9), scores)

    # softmax over last axis (f32 elementwise; EUP approximate reciprocal)
    smax = jnp.max(scores, axis=-1, keepdims=True)
    e = jnp.exp(scores - smax)
    attn = e * pl.reciprocal(jnp.sum(e, axis=-1, keepdims=True), approx=True)

    ctx = jnp.einsum("bqk,bkd->bqd",
                     attn.astype(matmul_dtype), v.astype(matmul_dtype),
                     preferred_element_type=f32)                      # (Bb, S, H)
    proj = jnp.dot(ctx.reshape(Bb * S, H).astype(matmul_dtype), wo_ref[...],
                   preferred_element_type=f32)                        # (Bb*S, H)

    h1 = _layer_norm(proj + xf, ln1g_ref[...], ln1b_ref[...])

    # ---- position-wise feed-forward ----
    f = jnp.dot(h1.astype(matmul_dtype), w1_ref[...],
                preferred_element_type=f32) + b1_ref[...]             # (Bb*S, 4H)
    if exact_gelu:
        # exact (erf) GELU, matching F.gelu default
        f = 0.5 * f * (1.0 + jax.lax.erf(f * (1.0 / math.sqrt(2.0))))
    else:
        # tanh approximation -> EUP slot (VALU relief); slight parity deviation
        f = jax.nn.gelu(f, approximate=True)
    f = jnp.dot(f.astype(matmul_dtype), w2_ref[...],
                preferred_element_type=f32) + b2_ref[...]             # (Bb*S, H)

    h2 = _layer_norm(f + h1, ln2g_ref[...], ln2b_ref[...])

    out_ref[...] = h2.reshape(Bb, S, H).astype(out_ref.dtype)
    if attn_refs:
        attn_refs[0][...] = attn.reshape(Bb, 1, S, S).astype(attn_refs[0].dtype)


def bert4rec_block(enc, key_mask, params, *, block_b=None,
                   matmul_dtype=jnp.bfloat16, exact_gelu=True,
                   return_attn=True, attn_dtype=jnp.float32,
                   vmem_limit_bytes=64 * 1024 * 1024):
    """enc: (B, S, H) f32; key_mask: (B, S) int32/bool, 0 = padded key position.

    Returns (out (B, S, H), attn (B, 1, S, S)) when return_attn else out only.
    matmul_dtype=bf16 (default) keeps f32 accumulation on the MXU; set
    jnp.float32 for bit-tighter parity checks.
    """
    B, S, H = enc.shape
    if key_mask.ndim != 2:
        raise ValueError("key_mask must be (B, S)")

    if block_b is None:
        block_b = min(B, max(1, pl.cdiv(128, S)))   # fill >=128 MXU rows per step
        if B >= 2:
            # keep >= 2 grid steps so the "parallel" axis shards over v7x's 2 TCs
            block_b = min(block_b, max(1, B // 2))

    Bp = pl.cdiv(B, block_b) * block_b
    kmask = key_mask.astype(jnp.int32).reshape(B, 1, S)
    if Bp != B:
        enc = jnp.pad(enc, ((0, Bp - B), (0, 0), (0, 0)))
        kmask = jnp.pad(kmask, ((0, Bp - B), (0, 0), (0, 0)), constant_values=1)

    # Host-side weight prep: pre-transpose to (in, out); fold 1/sqrt(H) into W_Q;
    # fuse Q/K/V into one (H, 3H) operand; cast MXU weights to matmul_dtype once.
    scale = jnp.float32(1.0 / math.sqrt(H))
    wqkv = jnp.concatenate(
        [params["wq"].T * scale, params["wk"].T, params["wv"].T], axis=1
    ).astype(matmul_dtype)                                   # (H, 3H)
    weights = [
        wqkv,
        params["wo"].T.astype(matmul_dtype),                 # (H, H)
        params["ln1_g"], params["ln1_b"],                    # f32 (1, H)
        params["w1"].T.astype(matmul_dtype), params["b1"],   # (H, 4H), f32 (1, 4H)
        params["w2"].T.astype(matmul_dtype), params["b2"],   # (4H, H), f32 (1, H)
        params["ln2_g"], params["ln2_b"],                    # f32 (1, H)
    ]

    def full_spec(a):
        # Constant index map -> block index never changes across the grid, so these
        # weights are DMA'd into VMEM once (not re-fetched per batch block).  If
        # VMEM is tight (v7x), pipeline_mode=pl.Buffered(1) would single-buffer them.
        return pl.BlockSpec(a.shape, lambda b, n=a.ndim: (0,) * n)

    in_specs = [
        pl.BlockSpec((block_b, S, H), lambda b: (b, 0, 0)),
        pl.BlockSpec((block_b, 1, S), lambda b: (b, 0, 0)),
    ] + [full_spec(w) for w in weights]

    out_specs = [pl.BlockSpec((block_b, S, H), lambda b: (b, 0, 0))]
    out_shape = [jax.ShapeDtypeStruct((Bp, S, H), enc.dtype)]
    if return_attn:
        out_specs.append(pl.BlockSpec((block_b, 1, S, S), lambda b: (b, 0, 0, 0)))
        out_shape.append(jax.ShapeDtypeStruct((Bp, 1, S, S), attn_dtype))

    kernel = functools.partial(bert4rec_block_kernel,
                               matmul_dtype=matmul_dtype, exact_gelu=exact_gelu)

    results = pl.pallas_call(
        kernel,
        out_shape=tuple(out_shape),
        grid=(Bp // block_b,),
        in_specs=in_specs,
        out_specs=tuple(out_specs),
        compiler_params=pltpu.CompilerParams(
            dimension_semantics=("parallel",),
            vmem_limit_bytes=vmem_limit_bytes,
        ),
    )(enc, kmask, *weights)

    if return_attn:
        out, attn = results
        return out[:B], attn[:B]
    out = results[0] if isinstance(results, (tuple, list)) else results
    return out[:B]


def reference(enc, key_mask, params):
    """Pure-JAX reference of the PyTorch forward (num_heads=1, eval mode)."""
    B, S, H = enc.shape
    mask = jnp.broadcast_to(key_mask[:, None, None, :].astype(jnp.int32),
                            (B, 1, S, S))

    def ln(x, g, b):
        mu = x.mean(-1, keepdims=True)
        var = ((x - mu) ** 2).mean(-1, keepdims=True)
        return (x - mu) * jax.lax.rsqrt(var + LN_EPS) * g[0] + b[0]

    q = enc @ params["wq"].T
    k = enc @ params["wk"].T
    v = enc @ params["wv"].T
    scores = jnp.einsum("bqd,bkd->bqk", q, k) / math.sqrt(H)
    scores = jnp.where(mask[:, 0] == 0, -1e9, scores)
    attn = jax.nn.softmax(scores, axis=-1)
    ctx = jnp.einsum("bqk,bkd->bqd", attn, v)
    h1 = ln(ctx @ params["wo"].T + enc, params["ln1_g"], params["ln1_b"])
    f = h1 @ params["w1"].T + params["b1"][0]
    f = 0.5 * f * (1.0 + jax.lax.erf(f / math.sqrt(2.0)))
    f = f @ params["w2"].T + params["b2"][0]
    h2 = ln(f + h1, params["ln2_g"], params["ln2_b"])
    return h2, attn[:, None]


def make_params(key, H):
    ks = jax.random.split(key, 6)
    scale = 0.02
    return {
        "wq": scale * jax.random.normal(ks[0], (H, H), jnp.float32),
        "wk": scale * jax.random.normal(ks[1], (H, H), jnp.float32),
        "wv": scale * jax.random.normal(ks[2], (H, H), jnp.float32),
        "wo": scale * jax.random.normal(ks[3], (H, H), jnp.float32),
        "ln1_g": jnp.ones((1, H), jnp.float32),
        "ln1_b": jnp.zeros((1, H), jnp.float32),
        "w1": scale * jax.random.normal(ks[4], (4 * H, H), jnp.float32),
        "b1": jnp.zeros((1, 4 * H), jnp.float32),
        "w2": scale * jax.random.normal(ks[5], (H, 4 * H), jnp.float32),
        "b2": jnp.zeros((1, H), jnp.float32),
        "ln2_g": jnp.ones((1, H), jnp.float32),
        "ln2_b": jnp.zeros((1, H), jnp.float32),
    }


if __name__ == "__main__":
    B, S, H = 2, 8, 32        # num_heads = 1 (see note above)

    key = jax.random.PRNGKey(0)
    k_enc, k_par = jax.random.split(key)

    enc = jax.random.normal(k_enc, (B, S, H), jnp.float32)

    # key-padding mask: batch 0 sees all 8 positions, batch 1 only the first 5
    lens = jnp.array([8, 5], jnp.int32)
    key_mask = (jnp.arange(S)[None, :] < lens[:, None]).astype(jnp.int32)   # (B, S)

    params = make_params(k_par, H)

    # Production-default path: bf16 MXU operands with f32 accumulation.
    out_bf16, attn_bf16 = bert4rec_block(enc, key_mask, params)
    out_bf16 = jax.block_until_ready(out_bf16)
    attn_bf16 = jax.block_until_ready(attn_bf16)

    # f32 MXU path for a tight numerical check against the PyTorch-equivalent ref.
    out_f32, attn_f32 = bert4rec_block(enc, key_mask, params,
                                       matmul_dtype=jnp.float32)
    out_f32 = jax.block_until_ready(out_f32)
    attn_f32 = jax.block_until_ready(attn_f32)

    ref_out, ref_attn = reference(enc, key_mask, params)

    # f32 path: tolerance loosened only for the EUP approximate reciprocal in softmax.
    np.testing.assert_allclose(np.asarray(out_f32), np.asarray(ref_out),
                               rtol=1e-3, atol=1e-3)
    np.testing.assert_allclose(np.asarray(attn_f32), np.asarray(ref_attn),
                               rtol=1e-3, atol=1e-3)
    # bf16-MXU path: quantization of Q/K/V, attn probs and FFN activations to bf16.
    np.testing.assert_allclose(np.asarray(out_bf16), np.asarray(ref_out),
                               rtol=3e-2, atol=3e-2)
    np.testing.assert_allclose(np.asarray(attn_bf16), np.asarray(ref_attn),
                               rtol=3e-2, atol=3e-2)

    print("KERNEL_OK")
</pallas_src>

<mosaic_0001>
module attributes {stable_mosaic.version = 11 : i64} {
  func.func @bert4rec_block_kernel(%arg0: i32, %arg1: memref<1x8x32xf32, #tpu.memory_space<vmem>>, %arg2: memref<1x1x8xi32, #tpu.memory_space<vmem>>, %arg3: memref<32x96xbf16, #tpu.memory_space<vmem>>, %arg4: memref<32x32xbf16, #tpu.memory_space<vmem>>, %arg5: memref<1x32xf32, #tpu.memory_space<vmem>>, %arg6: memref<1x32xf32, #tpu.memory_space<vmem>>, %arg7: memref<32x128xbf16, #tpu.memory_space<vmem>>, %arg8: memref<1x128xf32, #tpu.memory_space<vmem>>, %arg9: memref<128x32xbf16, #tpu.memory_space<vmem>>, %arg10: memref<1x32xf32, #tpu.memory_space<vmem>>, %arg11: memref<1x32xf32, #tpu.memory_space<vmem>>, %arg12: memref<1x32xf32, #tpu.memory_space<vmem>>, %arg13: memref<1x8x32xf32, #tpu.memory_space<vmem>>, %arg14: memref<1x1x8x8xf32, #tpu.memory_space<vmem>>) attributes {dimension_semantics = [#tpu.dimension_semantics<parallel>], iteration_bounds = array<i64: 2>, scalar_prefetch = 0 : i64, scratch_operands = 0 : i64, tpu.core_type = #tpu.core_type<tc>, window_params = [{transform_indices = @transform_0, window_bounds = array<i64: 1, 8, 32>}, {transform_indices = @transform_1, window_bounds = array<i64: 1, 1, 8>}, {pipeline_mode = #tpu.pipeline_mode<synchronous>, transform_indices = @transform_2, window_bounds = array<i64: 32, 96>}, {pipeline_mode = #tpu.pipeline_mode<synchronous>, transform_indices = @transform_3, window_bounds = array<i64: 32, 32>}, {pipeline_mode = #tpu.pipeline_mode<synchronous>, transform_indices = @transform_4, window_bounds = array<i64: 1, 32>}, {pipeline_mode = #tpu.pipeline_mode<synchronous>, transform_indices = @transform_5, window_bounds = array<i64: 1, 32>}, {pipeline_mode = #tpu.pipeline_mode<synchronous>, transform_indices = @transform_6, window_bounds = array<i64: 32, 128>}, {pipeline_mode = #tpu.pipeline_mode<synchronous>, transform_indices = @transform_7, window_bounds = array<i64: 1, 128>}, {pipeline_mode = #tpu.pipeline_mode<synchronous>, transform_indices = @transform_8, window_bounds = array<i64: 128, 32>}, {pipeline_mode = #tpu.pipeline_mode<synchronous>, transform_indices = @transform_9, window_bounds = array<i64: 1, 32>}, {pipeline_mode = #tpu.pipeline_mode<synchronous>, transform_indices = @transform_10, window_bounds = array<i64: 1, 32>}, {pipeline_mode = #tpu.pipeline_mode<synchronous>, transform_indices = @transform_11, window_bounds = array<i64: 1, 32>}, {transform_indices = @transform_12, window_bounds = array<i64: 1, 8, 32>}, {transform_indices = @transform_13, window_bounds = array<i64: 1, 1, 8, 8>}]} {
    %c0 = arith.constant 0 : index
    %c0_0 = arith.constant 0 : index
    %c0_1 = arith.constant 0 : index
    %0 = vector.load %arg1[%c0, %c0_0, %c0_1] : memref<1x8x32xf32, #tpu.memory_space<vmem>>, vector<1x8x32xf32>
    %1 = vector.shape_cast %0 : vector<1x8x32xf32> to vector<8x32xf32>
    %2 = arith.truncf %1 : vector<8x32xf32> to vector<8x32xbf16>
    %c0_2 = arith.constant 0 : index
    %c0_3 = arith.constant 0 : index
    %3 = vector.load %arg3[%c0_2, %c0_3] : memref<32x96xbf16, #tpu.memory_space<vmem>>, vector<32x96xbf16>
    %cst = arith.constant dense<0.000000e+00> : vector<8x96xf32>
    %4 = tpu.matmul %2, %3, %cst {dimension_numbers = #tpu.dot_dimension_numbers<[1], [0], [0], [1], [0, 0, 1, 1], [], []>} : vector<8x32xbf16>, vector<32x96xbf16>, vector<8x96xf32> -> vector<8x96xf32>
    %5 = vector.extract_strided_slice %4 {offsets = [0, 0], sizes = [8, 32], strides = [1, 1]} : vector<8x96xf32> to vector<8x32xf32>
    %6 = vector.shape_cast %5 : vector<8x32xf32> to vector<1x8x32xf32>
    %7 = vector.extract_strided_slice %4 {offsets = [0, 32], sizes = [8, 32], strides = [1, 1]} : vector<8x96xf32> to vector<8x32xf32>
    %8 = vector.shape_cast %7 : vector<8x32xf32> to vector<1x8x32xf32>
    %9 = vector.extract_strided_slice %4 {offsets = [0, 64], sizes = [8, 32], strides = [1, 1]} : vector<8x96xf32> to vector<8x32xf32>
    %10 = vector.shape_cast %9 : vector<8x32xf32> to vector<1x8x32xf32>
    %11 = arith.truncf %6 : vector<1x8x32xf32> to vector<1x8x32xbf16>
    %12 = arith.truncf %8 : vector<1x8x32xf32> to vector<1x8x32xbf16>
    "tpu.trace_start"() <{level = 10 : i32, message = "bqd,bkd->bqk"}> : () -> ()
    %cst_4 = arith.constant dense<0.000000e+00> : vector<1x8x8xf32>
    %13 = tpu.matmul %11, %12, %cst_4 {dimension_numbers = #tpu.dot_dimension_numbers<[2], [2], [1], [1], [0, 0, 0, 1, 1, 1], [0], [0]>} : vector<1x8x32xbf16>, vector<1x8x32xbf16>, vector<1x8x8xf32> -> vector<1x8x8xf32>
    "tpu.trace_stop"() : () -> ()
    %c0_5 = arith.constant 0 : index
    %c0_6 = arith.constant 0 : index
    %c0_7 = arith.constant 0 : index
    %14 = vector.load %arg2[%c0_5, %c0_6, %c0_7] : memref<1x1x8xi32, #tpu.memory_space<vmem>>, vector<1x1x8xi32>
    %c0_i32 = arith.constant 0 : i32
    %15 = vector.broadcast %c0_i32 : i32 to vector<1x1x8xi32>
    %16 = arith.cmpi eq, %14, %15 : vector<1x1x8xi32>
    %cst_8 = arith.constant -1.000000e+09 : f32
    %17 = vector.shape_cast %16 : vector<1x1x8xi1> to vector<1x1x8xi1>
    %18 = vector.broadcast %17 : vector<1x1x8xi1> to vector<1x8x8xi1>
    %19 = vector.broadcast %cst_8 : f32 to vector<1x8x8xf32>
    %20 = arith.select %18, %19, %13 : vector<1x8x8xi1>, vector<1x8x8xf32>
    %cst_9 = arith.constant dense<0xFF800000> : vector<1x8xf32>
    %21 = vector.multi_reduction <maximumf>, %20, %cst_9 [2] : vector<1x8x8xf32> to vector<1x8xf32>
    %22 = vector.shape_cast %21 : vector<1x8xf32> to vector<1x8x1xf32>
    %23 = vector.broadcast %22 : vector<1x8x1xf32> to vector<1x8x8xf32>
    %24 = arith.subf %20, %23 : vector<1x8x8xf32>
    %25 = math.exp %24 : vector<1x8x8xf32>
    %cst_10 = arith.constant dense<0.000000e+00> : vector<1x8xf32>
    %26 = vector.multi_reduction <add>, %25, %cst_10 [2] : vector<1x8x8xf32> to vector<1x8xf32>
    %27 = vector.shape_cast %26 : vector<1x8xf32> to vector<1x8x1xf32>
    %28 = tpu.reciprocal %27 {approx = true} : vector<1x8x1xf32> -> vector<1x8x1xf32>
    %29 = vector.broadcast %28 : vector<1x8x1xf32> to vector<1x8x8xf32>
    %30 = arith.mulf %25, %29 : vector<1x8x8xf32>
    %31 = arith.truncf %30 : vector<1x8x8xf32> to vector<1x8x8xbf16>
    %32 = arith.truncf %10 : vector<1x8x32xf32> to vector<1x8x32xbf16>
    "tpu.trace_start"() <{level = 10 : i32, message = "bqk,bkd->bqd"}> : () -> ()
    %cst_11 = arith.constant dense<0.000000e+00> : vector<1x8x32xf32>
    %33 = tpu.matmul %31, %32, %cst_11 {dimension_numbers = #tpu.dot_dimension_numbers<[2], [1], [1], [2], [0, 0, 0, 1, 1, 2], [0], [0]>} : vector<1x8x8xbf16>, vector<1x8x32xbf16>, vector<1x8x32xf32> -> vector<1x8x32xf32>
    "tpu.trace_stop"() : () -> ()
    %34 = vector.shape_cast %33 : vector<1x8x32xf32> to vector<8x32xf32>
    %35 = arith.truncf %34 : vector<8x32xf32> to vector<8x32xbf16>
    %c0_12 = arith.constant 0 : index
    %c0_13 = arith.constant 0 : index
    %36 = vector.load %arg4[%c0_12, %c0_13] : memref<32x32xbf16, #tpu.memory_space<vmem>>, vector<32x32xbf16>
    %cst_14 = arith.constant dense<0.000000e+00> : vector<8x32xf32>
    %37 = tpu.matmul %35, %36, %cst_14 {dimension_numbers = #tpu.dot_dimension_numbers<[1], [0], [0], [1], [0, 0, 1, 1], [], []>} : vector<8x32xbf16>, vector<32x32xbf16>, vector<8x32xf32> -> vector<8x32xf32>
    %38 = arith.addf %37, %1 : vector<8x32xf32>
    %c0_15 = arith.constant 0 : index
    %c0_16 = arith.constant 0 : index
    %39 = vector.load %arg5[%c0_15, %c0_16] : memref<1x32xf32, #tpu.memory_space<vmem>>, vector<1x32xf32>
    %c0_17 = arith.constant 0 : index
    %c0_18 = arith.constant 0 : index
    %40 = vector.load %arg6[%c0_17, %c0_18] : memref<1x32xf32, #tpu.memory_space<vmem>>, vector<1x32xf32>
    %cst_19 = arith.constant dense<0.000000e+00> : vector<8xf32>
    %41 = vector.multi_reduction <add>, %38, %cst_19 [1] : vector<8x32xf32> to vector<8xf32>
    %42 = vector.shape_cast %41 : vector<8xf32> to vector<8x1xf32>
    %cst_20 = arith.constant 3.200000e+01 : f32
    %43 = vector.broadcast %cst_20 : f32 to vector<8x1xf32>
    %44 = arith.divf %42, %43 : vector<8x1xf32>
    %45 = vector.broadcast %44 : vector<8x1xf32> to vector<8x32xf32>
    %46 = arith.subf %38, %45 : vector<8x32xf32>
    %47 = vector.broadcast %44 : vector<8x1xf32> to vector<8x32xf32>
    %48 = arith.subf %38, %47 : vector<8x32xf32>
    %49 = arith.mulf %46, %48 : vector<8x32xf32>
    %cst_21 = arith.constant dense<0.000000e+00> : vector<8xf32>
    %50 = vector.multi_reduction <add>, %49, %cst_21 [1] : vector<8x32xf32> to vector<8xf32>
    %51 = vector.shape_cast %50 : vector<8xf32> to vector<8x1xf32>
    %cst_22 = arith.constant 3.200000e+01 : f32
    %52 = vector.broadcast %cst_22 : f32 to vector<8x1xf32>
    %53 = arith.divf %51, %52 : vector<8x1xf32>
    %54 = vector.broadcast %44 : vector<8x1xf32> to vector<8x32xf32>
    %55 = arith.subf %38, %54 : vector<8x32xf32>
    %cst_23 = arith.constant 9.99999997E-7 : f32
    %56 = vector.broadcast %cst_23 : f32 to vector<8x1xf32>
    %57 = arith.addf %53, %56 : vector<8x1xf32>
    %58 = math.rsqrt %57 : vector<8x1xf32>
    %59 = vector.broadcast %58 : vector<8x1xf32> to vector<8x32xf32>
    %60 = arith.mulf %55, %59 : vector<8x32xf32>
    %61 = vector.broadcast %39 : vector<1x32xf32> to vector<8x32xf32>
    %62 = arith.mulf %60, %61 : vector<8x32xf32>
    %63 = vector.broadcast %40 : vector<1x32xf32> to vector<8x32xf32>
    %64 = arith.addf %62, %63 : vector<8x32xf32>
    %65 = arith.truncf %64 : vector<8x32xf32> to vector<8x32xbf16>
    %c0_24 = arith.constant 0 : index
    %c0_25 = arith.constant 0 : index
    %66 = vector.load %arg7[%c0_24, %c0_25] : memref<32x128xbf16, #tpu.memory_space<vmem>>, vector<32x128xbf16>
    %cst_26 = arith.constant dense<0.000000e+00> : vector<8x128xf32>
    %67 = tpu.matmul %65, %66, %cst_26 {dimension_numbers = #tpu.dot_dimension_numbers<[1], [0], [0], [1], [0, 0, 1, 1], [], []>} : vector<8x32xbf16>, vector<32x128xbf16>, vector<8x128xf32> -> vector<8x128xf32>
    %c0_27 = arith.constant 0 : index
    %c0_28 = arith.constant 0 : index
    %68 = vector.load %arg8[%c0_27, %c0_28] : memref<1x128xf32, #tpu.memory_space<vmem>>, vector<1x128xf32>
    %69 = vector.broadcast %68 : vector<1x128xf32> to vector<8x128xf32>
    %70 = arith.addf %67, %69 : vector<8x128xf32>
    %cst_29 = arith.constant 5.000000e-01 : f32
    %71 = vector.broadcast %cst_29 : f32 to vector<8x128xf32>
    %72 = arith.mulf %71, %70 : vector<8x128xf32>
    %cst_30 = arith.constant 0.707106769 : f32
    %73 = vector.broadcast %cst_30 : f32 to vector<8x128xf32>
    %74 = arith.mulf %70, %73 : vector<8x128xf32>
    %75 = math.erf %74 : vector<8x128xf32>
    %cst_31 = arith.constant 1.000000e+00 : f32
    %76 = vector.broadcast %cst_31 : f32 to vector<8x128xf32>
    %77 = arith.addf %76, %75 : vector<8x128xf32>
    %78 = arith.mulf %72, %77 : vector<8x128xf32>
    %79 = arith.truncf %78 : vector<8x128xf32> to vector<8x128xbf16>
    %c0_32 = arith.constant 0 : index
    %c0_33 = arith.constant 0 : index
    %80 = vector.load %arg9[%c0_32, %c0_33] : memref<128x32xbf16, #tpu.memory_space<vmem>>, vector<128x32xbf16>
    %cst_34 = arith.constant dense<0.000000e+00> : vector<8x32xf32>
    %81 = tpu.matmul %79, %80, %cst_34 {dimension_numbers = #tpu.dot_dimension_numbers<[1], [0], [0], [1], [0, 0, 1, 1], [], []>} : vector<8x128xbf16>, vector<128x32xbf16>, vector<8x32xf32> -> vector<8x32xf32>
    %c0_35 = arith.constant 0 : index
    %c0_36 = arith.constant 0 : index
    %82 = vector.load %arg10[%c0_35, %c0_36] : memref<1x32xf32, #tpu.memory_space<vmem>>, vector<1x32xf32>
    %83 = vector.broadcast %82 : vector<1x32xf32> to vector<8x32xf32>
    %84 = arith.addf %81, %83 : vector<8x32xf32>
    %85 = arith.addf %84, %64 : vector<8x32xf32>
    %c0_37 = arith.constant 0 : index
    %c0_38 = arith.constant 0 : index
    %86 = vector.load %arg11[%c0_37, %c0_38] : memref<1x32xf32, #tpu.memory_space<vmem>>, vector<1x32xf32>
    %c0_39 = arith.constant 0 : index
    %c0_40 = arith.constant 0 : index
    %87 = vector.load %arg12[%c0_39, %c0_40] : memref<1x32xf32, #tpu.memory_space<vmem>>, vector<1x32xf32>
    %cst_41 = arith.constant dense<0.000000e+00> : vector<8xf32>
    %88 = vector.multi_reduction <add>, %85, %cst_41 [1] : vector<8x32xf32> to vector<8xf32>
    %89 = vector.shape_cast %88 : vector<8xf32> to vector<8x1xf32>
    %cst_42 = arith.constant 3.200000e+01 : f32
    %90 = vector.broadcast %cst_42 : f32 to vector<8x1xf32>
    %91 = arith.divf %89, %90 : vector<8x1xf32>
    %92 = vector.broadcast %91 : vector<8x1xf32> to vector<8x32xf32>
    %93 = arith.subf %85, %92 : vector<8x32xf32>
    %94 = vector.broadcast %91 : vector<8x1xf32> to vector<8x32xf32>
    %95 = arith.subf %85, %94 : vector<8x32xf32>
    %96 = arith.mulf %93, %95 : vector<8x32xf32>
    %cst_43 = arith.constant dense<0.000000e+00> : vector<8xf32>
    %97 = vector.multi_reduction <add>, %96, %cst_43 [1] : vector<8x32xf32> to vector<8xf32>
    %98 = vector.shape_cast %97 : vector<8xf32> to vector<8x1xf32>
    %cst_44 = arith.constant 3.200000e+01 : f32
    %99 = vector.broadcast %cst_44 : f32 to vector<8x1xf32>
    %100 = arith.divf %98, %99 : vector<8x1xf32>
    %101 = vector.broadcast %91 : vector<8x1xf32> to vector<8x32xf32>
    %102 = arith.subf %85, %101 : vector<8x32xf32>
    %cst_45 = arith.constant 9.99999997E-7 : f32
    %103 = vector.broadcast %cst_45 : f32 to vector<8x1xf32>
    %104 = arith.addf %100, %103 : vector<8x1xf32>
    %105 = math.rsqrt %104 : vector<8x1xf32>
    %106 = vector.broadcast %105 : vector<8x1xf32> to vector<8x32xf32>
    %107 = arith.mulf %102, %106 : vector<8x32xf32>
    %108 = vector.broadcast %86 : vector<1x32xf32> to vector<8x32xf32>
    %109 = arith.mulf %107, %108 : vector<8x32xf32>
    %110 = vector.broadcast %87 : vector<1x32xf32> to vector<8x32xf32>
    %111 = arith.addf %109, %110 : vector<8x32xf32>
    %112 = vector.shape_cast %111 : vector<8x32xf32> to vector<1x8x32xf32>
    %c0_46 = arith.constant 0 : index
    %c0_47 = arith.constant 0 : index
    %c0_48 = arith.constant 0 : index
    %113 = vector.load %arg13[%c0_46, %c0_47, %c0_48] : memref<1x8x32xf32, #tpu.memory_space<vmem>>, vector<1x8x32xf32>
    tpu.vector_store %arg13[%c0_46, %c0_47, %c0_48], %112 {strides = array<i32>} : memref<1x8x32xf32, #tpu.memory_space<vmem>>, vector<1x8x32xf32>,
    %114 = vector.shape_cast %30 : vector<1x8x8xf32> to vector<1x1x8x8xf32>
    %c0_49 = arith.constant 0 : index
    %c0_50 = arith.constant 0 : index
    %c0_51 = arith.constant 0 : index
    %c0_52 = arith.constant 0 : index
    %115 = vector.load %arg14[%c0_49, %c0_50, %c0_51, %c0_52] : memref<1x1x8x8xf32, #tpu.memory_space<vmem>>, vector<1x1x8x8xf32>
    tpu.vector_store %arg14[%c0_49, %c0_50, %c0_51, %c0_52], %114 {strides = array<i32>} : memref<1x1x8x8xf32, #tpu.memory_space<vmem>>, vector<1x1x8x8xf32>,
    return
  }
  func.func @transform_0(%arg0: i32) -> (i32, i32, i32) {
    %c0_i32 = arith.constant 0 : i32
    %c0_i32_0 = arith.constant 0 : i32
    %c0_i32_1 = arith.constant 0 : i32
    return %arg0, %c0_i32, %c0_i32_0 : i32, i32, i32
  }
  func.func @transform_1(%arg0: i32) -> (i32, i32, i32) {
    %c0_i32 = arith.constant 0 : i32
    %c0_i32_0 = arith.constant 0 : i32
    %c0_i32_1 = arith.constant 0 : i32
    return %arg0, %c0_i32, %c0_i32_0 : i32, i32, i32
  }
  func.func @transform_2(%arg0: i32) -> (i32, i32) {
    %c0_i32 = arith.constant 0 : i32
    %c0_i32_0 = arith.constant 0 : i32
    %c0_i32_1 = arith.constant 0 : i32
    return %c0_i32, %c0_i32_0 : i32, i32
  }
  func.func @transform_3(%arg0: i32) -> (i32, i32) {
    %c0_i32 = arith.constant 0 : i32
    %c0_i32_0 = arith.constant 0 : i32
    %c0_i32_1 = arith.constant 0 : i32
    return %c0_i32, %c0_i32_0 : i32, i32
  }
  func.func @transform_4(%arg0: i32) -> (i32, i32) {
    %c0_i32 = arith.constant 0 : i32
    %c0_i32_0 = arith.constant 0 : i32
    %c0_i32_1 = arith.constant 0 : i32
    return %c0_i32, %c0_i32_0 : i32, i32
  }
  func.func @transform_5(%arg0: i32) -> (i32, i32) {
    %c0_i32 = arith.constant 0 : i32
    %c0_i32_0 = arith.constant 0 : i32
    %c0_i32_1 = arith.constant 0 : i32
    return %c0_i32, %c0_i32_0 : i32, i32
  }
  func.func @transform_6(%arg0: i32) -> (i32, i32) {
    %c0_i32 = arith.constant 0 : i32
    %c0_i32_0 = arith.constant 0 : i32
    %c0_i32_1 = arith.constant 0 : i32
    return %c0_i32, %c0_i32_0 : i32, i32
  }
  func.func @transform_7(%arg0: i32) -> (i32, i32) {
    %c0_i32 = arith.constant 0 : i32
    %c0_i32_0 = arith.constant 0 : i32
    %c0_i32_1 = arith.constant 0 : i32
    return %c0_i32, %c0_i32_0 : i32, i32
  }
  func.func @transform_8(%arg0: i32) -> (i32, i32) {
    %c0_i32 = arith.constant 0 : i32
    %c0_i32_0 = arith.constant 0 : i32
    %c0_i32_1 = arith.constant 0 : i32
    return %c0_i32, %c0_i32_0 : i32, i32
  }
  func.func @transform_9(%arg0: i32) -> (i32, i32) {
    %c0_i32 = arith.constant 0 : i32
    %c0_i32_0 = arith.constant 0 : i32
    %c0_i32_1 = arith.constant 0 : i32
    return %c0_i32, %c0_i32_0 : i32, i32
  }
  func.func @transform_10(%arg0: i32) -> (i32, i32) {
    %c0_i32 = arith.constant 0 : i32
    %c0_i32_0 = arith.constant 0 : i32
    %c0_i32_1 = arith.constant 0 : i32
    return %c0_i32, %c0_i32_0 : i32, i32
  }
  func.func @transform_11(%arg0: i32) -> (i32, i32) {
    %c0_i32 = arith.constant 0 : i32
    %c0_i32_0 = arith.constant 0 : i32
    %c0_i32_1 = arith.constant 0 : i32
    return %c0_i32, %c0_i32_0 : i32, i32
  }
  func.func @transform_12(%arg0: i32) -> (i32, i32, i32) {
    %c0_i32 = arith.constant 0 : i32
    %c0_i32_0 = arith.constant 0 : i32
    %c0_i32_1 = arith.constant 0 : i32
    return %arg0, %c0_i32, %c0_i32_0 : i32, i32, i32
  }
  func.func @transform_13(%arg0: i32) -> (i32, i32, i32, i32) {
    %c0_i32 = arith.constant 0 : i32
    %c0_i32_0 = arith.constant 0 : i32
    %c0_i32_1 = arith.constant 0 : i32
    %c0_i32_2 = arith.constant 0 : i32
    return %arg0, %c0_i32, %c0_i32_0, %c0_i32_1 : i32, i32, i32, i32
  }
}

</mosaic_0001>

<bundles_post_ra>
// kernel: tpu_custom_call.1
= control target key start
LH: loop header
LB: loop body
LE: loop exit
PB: predicated region body
PF: predicated region fallthrough
CT: control target
= control target key end

     0   :  { %s1670_s0 = inlined_call_operand.vmem [shape: f32[2,8,32], index: 0, kind: input, shape index: {}]   ;;  %s1671_s1 = inlined_call_operand.vmem [shape: s32[2,1,8], index: 1, kind: input, shape index: {}]   ;;  %s1672_s2 = inlined_call_operand.vmem [shape: bf16[32,96], index: 2, kind: input, shape index: {}]   ;;  %s1673_s3 = inlined_call_operand.vmem [shape: bf16[32,32], index: 3, kind: input, shape index: {}]   ;;  %s1674_s4 = inlined_call_operand.vmem [shape: f32[1,32], index: 4, kind: input, shape index: {}]   ;;  %s1675_s5 = inlined_call_operand.vmem [shape: f32[1,32], index: 5, kind: input, shape index: {}]   ;;  %s1676_s6 = inlined_call_operand.vmem [shape: bf16[32,128], index: 6, kind: input, shape index: {}]   ;;  %s1677_s7 = inlined_call_operand.vmem [shape: f32[1,128], index: 7, kind: input, shape index: {}]   ;;  %s1678_s8 = inlined_call_operand.vmem [shape: bf16[128,32], index: 8, kind: input, shape index: {}]   ;;  %s1679_s9 = inlined_call_operand.vmem [shape: f32[1,32], index: 9, kind: input, shape index: {}]   ;;  %s1680_s10 = inlined_call_operand.vmem [shape: f32[1,32], index: 10, kind: input, shape index: {}]   ;;  %s1681_s11 = inlined_call_operand.vmem [shape: f32[1,32], index: 11, kind: input, shape index: {}]   ;;  %s1682_s12 = inlined_call_operand.hbm [shape: f32[2,8,32], index: 12, kind: output, shape index: {0}]   ;;  %s1683_s13 = inlined_call_operand.hbm [shape: f32[2,1,8,8], index: 13, kind: output, shape index: {1}]  }
   0x1   :  { %1686 = sst [smem:[#allocation8_spill]] %s1670_s0 }
   0x2   :  { %1687 = sst [smem:[#allocation9_spill]] %s1671_s1 }
   0x3   :  { %1688 = sst [smem:[#allocation10_spill]] %s1672_s2 }
   0x4   :  { %1689 = sst [smem:[#allocation11_spill]] %s1673_s3 }
   0x5   :  { %1690 = sst [smem:[#allocation12_spill]] %s1674_s4 }
   0x6   :  { %1691 = sst [smem:[#allocation13_spill]] %s1675_s5 }
   0x7   :  { %19 = vsyncpa [#allocation3], 0 }
   0x8   :  { %21 = vsyncpa [#allocation3 + $0x1], 0 }
   0x9   :  { %22 = vsyncpa [#allocation5], 0 }
   0xa   :  { %24 = vsyncpa [#allocation5 + $0x1], 0  ;;  %s1441_s25 = smov 0   ;;  %s1443_s26 = smov 0  }
   0xb   :  { %s1445_s27 = smov 0   ;;  %s1447_s28 = smov 0  }
   0xc LB: > { %s1462_s29 = sadd.s32 4294967295, %s1362_s28   ;;  %s1083_s30 = sadd.s32 4294967294, %s1362_s28   ;;  %s1362_s28 = sphi %s1447_s28, %s1705_s28   ;;  %s1358_s27 = sphi %s1445_s27, %s1704_s27   ;;  %s1354_s26 = sphi %s1443_s26, %s1703_s26   ;;  %s1350_s25 = sphi %s1441_s25, %s1702_s25  }
   0xd   : > { %s1466_s14 = sadd.s32 1, %s1362_s28   ;;  %s299_s15 = sadd.s32 1, %s1358_s27 }
   0xe   : > { %s296_s16 = ssub.s32 %s1362_s28, %s1466_s14  ;;  %p309_p0 = scmp.ne.s32.totalorder %s1358_s27, %s1354_s26 }
   0xf   : > { %p297_p1 = scmp.eq.s32.totalorder %s296_s16, 0  ;;  %p310_p2 = scmp.eq.s32.totalorder %s1462_s29, 1 }
  0x10   : > { %p315_p3 = scmp.ne.s32.totalorder %s1354_s26, %s1350_s25  ;;  %p316_p4 = scmp.eq.s32.totalorder %s1083_s30, 1 }
  0x11   : > { %s1477_s17 = scalar_select %p297_p1, %s1358_s27, %s299_s15  }
  0x12   : > { %p1479_p5 = por %p310_p2, %p309_p0  ;;  %p1483_p6 = por %p316_p4, %p315_p3 }
  0x13   : > { %p1086_p7 = scmp.ge.s32.totalorder %s1362_s28, 1  ;;  %p403_p8 = scmp.lt.s32.totalorder %s1362_s28, 3 }
  0x15   : > { %p404_p9 = pnand %p1086_p7, %p403_p8 }
  0x16   : > { %s1694_s2 = sld [smem:[#allocation10_spill]] (!%p404_p9)  ;;  %p454_p10 = scmp.lt.s32.totalorder (!%p404_p9), %s1462_s29, 1 }
  0x17   : > { %407 = sbr.rel (%p404_p9) target bundleno = 2298 (0x8fa), region = 68  ;;  %s1695_s0 = sld [smem:[#allocation8_spill]] (!%p404_p9) }
  0x18   : > { %s1366_s21 = smov (!%p404_p9), 96   ;;  %s1696_s1 = sld [smem:[#allocation9_spill]] (!%p404_p9) }
  0x19   : > { %s1697_s3 = sld [smem:[#allocation11_spill]] (!%p404_p9)  ;;  %s1369_s16 = smov (!%p404_p9), [#allocation4]  }
  0x1a   : > { %s1698_s4 = sld [smem:[#allocation12_spill]] (!%p404_p9) }
  0x1b   : > { %s1699_s5 = sld [smem:[#allocation13_spill]] (!%p404_p9) }
  0x1c   : > { %v1248_v0 = vld [vmem:[%s1694_s2 + $0x8] sm:$0xff]   ;;  %v1364_v1 = vmov 0.0   ;;  %v1249_v2 = vld [vmem:[%s1694_s2] sm:$0xff]   ;;  %vm1365_vm0 = vmmov 0   ;;  %s455_s24 = scalar_select %p454_p10, %s1462_s29, 1  ;;  %vm480_vm1 = vcmask 261120   ;;  %v577_v12 = vlaneseq }
  0x1d   : > { %1143 = vmatprep.subr.bf16.mxu0 %v1364_v1  ;;  %1163 = vmatprep.subr.bf16.mxu1 %v1364_v1  ;;  %v1367_v16 = vmov 0   ;;  %vm583_vm4 = vcmask 64512   ;;  %vm601_vm5 = vcmask 1043456   ;;  %v1252_v54 = vld [vmem:[%s1676_s6 + $0x8] sm:$0xff]   ;;  %v1253_v55 = vld [vmem:[%s1676_s6] sm:$0xff]   ;;  %v1254_v56 = vld [vmem:[%s1678_s8 + $0x38] sm:$0xff]  }
  0x1e   : > { %1144 = vmatpush3.bf16.msra.mxu0 %v1248_v0  ;;  %1147 = vmatprep.mubr.msk.bf16.mxu0 %vm1365_vm0, %v1364_v1  ;;  %s1089_s30 = sshll.u32 %s455_s24, 3  ;;  %v578_v14 = vshrl.u32 %v577_v12, 7  ;;  %v1255_v57 = vld [vmem:[%s1678_s8 + $0x30] sm:$0xff]   ;;  %s1276_s2 = sshll.u32 %s1369_s16, 4  ;;  %s1277_s2 = int_to_ptr.vmem [resolvable:$false] %s1276_s2 }
  0x1f   : > { %1145 = vmatprep.subr.bf16.mxu0 %v1364_v1  ;;  %1167 = vmatprep.mubr.msk.bf16.mxu1 %vm1365_vm0, %v1364_v1  ;;  %s457_s20 = scalar_lea.vmem %s1695_s0, %s1089_s30  ;;  %s460_s30 = scalar_lea.vmem %s1696_s1, %s455_s24  ;;  %v1250_v30 = vld [vmem:[%s1697_s3 + $0x8] sm:$0xff]   ;;  %v1251_v37 = vld [vmem:[%s1697_s3] sm:$0xff]  }
  0x20   : > { %v1508_v3 = vld [vmem:[%s457_s20] sm:$0xff]  ;;  %v579_v15 = vsub.s32 0, %v578_v14  ;;  %s1368_s24 = smov 64   ;;  %1164 = vmatpush3.bf16.msra.mxu1 %v1250_v30  ;;  %s1531_s20 = sand.u32 1, %s1354_s26  }
  0x21   : > { %v463_v4 = vpack.c.bf16 %v1508_v3, %v1508_v3  ;;  %v574_v13 = vld [vmem:[%s460_s30] sm:$0x1]  ;;  %1165 = vmatprep.subr.bf16.mxu1 %v1364_v1  ;;  %s1685_s0 = sshll.u32 %s1462_s29, 7  ;;  %s957_s15 = scalar_lea.sflag [#allocation5], %s1531_s20 }
  0x22   : > { %1146 = vmatpush3.bf16.msra.mxu0 %v1249_v2  ;;  %vm575_vm2 = vcmp.eq.s32.totalorder %v574_v13, 0  ;;  %v1098_v62 = vld [vmem:[%s1698_s4] ss:$0 sm:$0xff]  ;;  %s981_s30 = scalar_lea.hbm %s1683_s13, %s1685_s0  ;;  %s1278_s3 = scalar_lea.vmem %s1277_s2, 256 }
  0x23   : > { %1151 = vmatprep.subr.bf16.mxu0 %v1364_v1  ;;  %v576_v17 = vsel %vm575_vm2, 1, %v1367_v16  ;;  %v1099_v0 = vld [vmem:[%s1699_s5] ss:$0 sm:$0xff] }
  0x24   : > { %v580_v18 = vrot.slane %v576_v17, %v579_v15  ;;  %1166 = vmatpush3.bf16.msra.mxu1 %v1251_v37 }
  0x25   : > { %1148 = vmatmul.mubr.msk.bf16.vlgmr.msra.gmra.mxu0 %vm480_vm1, %v463_v4  ;;  %1179 = vmatprep.subr.bf16.mxu1 %v1364_v1 }
  0x26   : > { %1153 = vmatprep.mubr.msk.bf16.mxu0 %vm1365_vm0, %v1364_v1  ;;  %vm581_vm3 = vcmp.eq.s32.totalorder %v580_v18, 1 }
  0xe5   : > { %v518_v5 = vpop.f32.mrf.mxu0 }
  0xe6   : > { %v524_v6 = vpack.c.bf16 %v518_v5, %v518_v5  ;;  %v1256_v5 = vld [vmem:[%s1678_s8 + $0x28] sm:$0xff]  }
  0xe7   : > { %v1149_v7 = vpop.f32.mrf.mxu0 }
  0xe8   : > { %526 = vrot.lane.b32.xlu0 %v524_v6, %s1366_s21  ;;  %s1684_s21 = sshll.u32 %s1531_s20, 3  ;;  %v1258_v7 = vld [vmem:[%s1678_s8 + $0x18] sm:$0xff]  }
  0xe9   : > { %v521_v8 = vpop.f32.mrf.mxu0  ;;  %s1536_s22 = scalar_lea.vmem [#allocation4], %s1684_s21 }
  0xea   : > { %v1259_v8 = vld [vmem:[%s1678_s8 + $0x10] sm:$0xff]  }
  0xeb   : > { %v1150_v9 = vpop.f32.mrf.mxu0 }
  0xec   : > { %v1260_v9 = vld [vmem:[%s1678_s8 + $0x8] sm:$0xff]  }
 0x15a   : > { %v527_v10 = vpop.permute.xlu0 %526 }
 0x15b   : > { %v532_v11 = vsel %vm480_vm1, %v527_v10, 0  ;;  %v1261_v10 = vld [vmem:[%s1678_s8] sm:$0xff]  }
 0x15c   : > { %1152 = vmatpush3.bf16.xpose.msra.mxu0 %v532_v11  ;;  %v1100_v11 = vld [vmem:[%s1677_s7] ss:$0 sm:$0xff] }
 0x15d   : > { %1157 = vmatprep.subr.bf16.mxu0 %v1364_v1 }
 0x163   : > { %1154 = vmatmul.mubr.msk.bf16.vlgmr.msra.gmra.mxu0 %vm480_vm1, %v524_v6 }
 0x164   : > { %1159 = vmatprep.mubr.msk.bf16.mxu0 %vm1365_vm0, %v1364_v1 }
 0x223   : > { %v568_v19 = vpop.f32.mrf.mxu0 }
 0x224   : > { %v582_v20 = vsel %vm581_vm3, -1e+09, %v568_v19 }
 0x225   : > { %v1155_v21 = vpop.f32.mrf.mxu0  ;;  %v584_v22 = vsel %vm583_vm4, %v582_v20, -inf }
 0x226   : > { %585 = vmax.xlane.f32.xlu0 %v584_v22  ;;  %v1104_v22 = vld [vmem:[%s1679_s9] ss:$0 sm:$0xff] }
 0x227   : > { %v571_v23 = vpop.f32.mrf.mxu0 }
 0x229   : > { %v1156_v24 = vpop.f32.mrf.mxu0 }
 0x2af   : > { %v586_v25 = vpop.xlane.xlu0 %585 }
 0x2b0   : > { %v587_v26 = vsub.f32 %v582_v20, %v586_v25 }
 0x2b2   : > { %v588_v27 = vmul.f32 1.442695, %v587_v26 }
 0x2b4   : > { %1262 = vpow2.f32 %v588_v27 }
 0x2c1   : > { %v1263_v28 = vpop.eup %1262 }
 0x2c2   : > { %v590_v29 = vsel %vm583_vm4, %v1263_v28, 0.0 }
 0x2c3   : > { %591 = vadd.xlane.f32.xlu1 %v590_v29 }
 0x2d4   : > { %596 = vrot.lane.b32.xlu1 %v524_v6, %s1368_s24  ;;  %v1257_v6 = vld [vmem:[%s1678_s8 + $0x20] sm:$0xff]   ;;  %s983_s24 = sshll.u32 %s1536_s22, 4  ;;  %s984_s24 = int_to_ptr.vmem [resolvable:$true] %s983_s24 }
 0x2d5   : > { %s1272_s21 = scalar_lea.vmem %s984_s24, 128  ;;  %p1279_p0 = scmp.lt.s32.totalorder %s984_s24, %s1277_s2 }
 0x2d6   : > { %p1273_p11 = scmp.ne.s32.totalorder %s984_s24, %s1272_s21  ;;  %p1280_p1 = scmp.lt.s32.totalorder %s1278_s3, %s1272_s21 }
 0x2d8   : > { %p1274_p12 = pnand %p1273_p11, %p1479_p5  ;;  %p1281_p2 = por %p1280_p1, %p1279_p0 }
 0x2da   : > { %p1275_p13 = pneg %p1274_p12 }
 0x2dc   : > { %p1282_p3 = pnand %p1281_p2, %p1275_p13 }
 0x34c   : > { %v592_v31 = vpop.xlane.xlu1 %591 }
 0x34d   : > { %1264 = vrcp.f32 %v592_v31 }
 0x350   : > { %v597_v32 = vpop.permute.xlu1 %596 }
 0x351   : > { %v603_v33 = vsel %vm601_vm5, %v597_v32, 0 }
 0x352   : > { %1158 = vmatpush3.bf16.msra.mxu0 %v603_v33 }
 0x353   : > { %1171 = vmatprep.subr.bf16.mxu0 %v1364_v1 }
 0x35a   : > { %v1265_v34 = vpop.eup %1264 }
 0x35b   : > { %v594_v35 = vmul.f32 %v1265_v34, %v1263_v28 }
 0x35d   : > { %v595_v36 = vpack.c.bf16 %v594_v35, %v594_v35  ;;  %950 = vst.msk [vmem:[%s1536_s22] sm:$0xff] %vm583_vm4, %v594_v35 }
 0x35f   : > { %1160 = vmatmul.mubr.msk.bf16.vlgmr.msra.gmra.mxu0 %vm583_vm4, %v595_v36 }
 0x360   : > { %1175 = vmatprep.mubr.msk.bf16.mxu0 %vm1365_vm0, %v1364_v1  ;;  %1172 = vmatpush3.bf16.msra.mxu0 %v1252_v54 }
 0x361   : > { %1173 = vmatprep.subr.bf16.mxu0 %v1364_v1 }
 0x364   : > { %1174 = vmatpush3.bf16.msra.mxu0 %v1253_v55 }
 0x41f   : > { %v639_v38 = vpop.f32.mrf.mxu0 }
 0x420   : > { %v645_v39 = vpack.c.bf16 %v639_v38, %v639_v38 }
 0x421   : > { %v1161_v40 = vpop.f32.mrf.mxu0 }
 0x422   : > { %1168 = vmatmul.mubr.msk.bf16.vlgmr.msra.gmra.mxu1 %vm480_vm1, %v645_v39 }
 0x423   : > { %v642_v41 = vpop.f32.mrf.mxu0  ;;  %1195 = vmatprep.mubr.msk.bf16.mxu1 %vm1365_vm0, %v1364_v1  ;;  %1180 = vmatpush3.bf16.msra.mxu1 %v1254_v56 }
 0x424   : > { %1181 = vmatprep.subr.bf16.mxu1 %v1364_v1 }
 0x425   : > { %v1162_v42 = vpop.f32.mrf.mxu0 }
 0x427   : > { %1182 = vmatpush3.bf16.msra.mxu1 %v1255_v57 }
 0x428   : > { %1183 = vmatprep.subr.bf16.mxu1 %v1364_v1 }
 0x42b   : > { %1184 = vmatpush3.bf16.msra.mxu1 %v1256_v5 }
 0x42c   : > { %1185 = vmatprep.subr.bf16.mxu1 %v1364_v1 }
 0x42f   : > { %1186 = vmatpush3.bf16.msra.mxu1 %v1257_v6 }
 0x430   : > { %1187 = vmatprep.subr.bf16.mxu1 %v1364_v1 }
 0x433   : > { %1188 = vmatpush3.bf16.msra.mxu1 %v1258_v7 }
 0x434   : > { %1189 = vmatprep.subr.bf16.mxu1 %v1364_v1 }
 0x437   : > { %1190 = vmatpush3.bf16.msra.mxu1 %v1259_v8 }
 0x438   : > { %1191 = vmatprep.subr.bf16.mxu1 %v1364_v1 }
 0x43b   : > { %1192 = vmatpush3.bf16.msra.mxu1 %v1260_v9 }
 0x43c   : > { %1193 = vmatprep.subr.bf16.mxu1 %v1364_v1 }
 0x43f   : > { %1194 = vmatpush3.bf16.msra.mxu1 %v1261_v10 }
 0x4e2   : > { %v699_v43 = vpop.f32.mrf.mxu1 }
 0x4e3   : > { %v700_v44 = vadd.f32 %v699_v43, %v1508_v3 }
 0x4e4   : > { %v1169_v45 = vpop.f32.mrf.mxu1 }
 0x4e5   : > { %v707_v46 = vsel %vm480_vm1, %v700_v44, 0.0 }
 0x4e6   : > { %708 = vadd.xlane.f32.xlu1 %v707_v46  ;;  %v702_v47 = vpop.f32.mrf.mxu1 }
 0x4e8   : > { %v1170_v48 = vpop.f32.mrf.mxu1 }
 0x56f   : > { %v709_v49 = vpop.xlane.xlu1 %708 }
 0x570   : > { %v711_v50 = vmul.f32 0.03125, %v709_v49 }
 0x572   : > { %v712_v51 = vsub.f32 %v700_v44, %v711_v50 }
 0x574   : > { %v713_v52 = vmul.f32 %v712_v51, %v712_v51 }
 0x576   : > { %v714_v53 = vsel %vm480_vm1, %v713_v52, 0.0 }
 0x577   : > { %715 = vadd.xlane.f32.xlu0 %v714_v53 }
 0x600   : > { %v716_v58 = vpop.xlane.xlu0 %715 }
 0x601   : > { %v717_v59 = vmul.f32 0.03125, %v716_v58 }
 0x603   : > { %v718_v60 = vadd.f32 1e-06, %v717_v59 }
 0x605   : > { %1266 = vrsqrt.f32 %v718_v60 }
 0x612   : > { %v1267_v61 = vpop.eup %1266 }
 0x613   : > { %v720_v63 = vmul.f32 %v1267_v61, %v712_v51 }
 0x615   : > { %v727_v2 = vmul.f32 %v1098_v62, %v720_v63 }
 0x617   : > { %v734_v3 = vadd.f32 %v1099_v0, %v727_v2 }
 0x619   : > { %v735_v4 = vpack.c.bf16 %v734_v3, %v734_v3 }
 0x61b   : > { %1176 = vmatmul.mubr.msk.bf16.vlgmr.msra.gmra.mxu0 %vm480_vm1, %v735_v4 }
 0x6db   : > { %v796_v12 = vpop.f32.mrf.mxu0 }
 0x6dc   : > { %v797_v13 = vadd.f32 %v1100_v11, %v796_v12 }
 0x6dd   : > { %v1177_v14 = vpop.f32.mrf.mxu0 }
 0x6de   : > { %v803_v15 = vmul.f32 0.70710677, %v797_v13  ;;  %v802_v19 = vmul.f32 0.5, %v797_v13 }
 0x6df   : > { %v799_v16 = vpop.f32.mrf.mxu0 }
 0x6e0   : > { %1268 = verf.f32 %v803_v15 }
 0x6e1   : > { %v1178_v17 = vpop.f32.mrf.mxu0 }
 0x6ed   : > { %v1269_v18 = vpop.eup %1268 }
 0x6ee   : > { %v805_v20 = vadd.f32 1.0, %v1269_v18 }
 0x6f0   : > { %v806_v1 = vmul.f32 %v805_v20, %v802_v19 }
 0x6f2   : > { %v807_v21 = vpack.c.bf16 %v806_v1, %v806_v1 }
 0x6f4   : > { %1196 = vmatmul.mubr.bf16.vlgmr.msra.gmra.mxu1 %v807_v21 }
 0x7b4   : > { %v913_v23 = vpop.f32.mrf.mxu1 }
 0x7b5   : > { %v914_v24 = vadd.f32 %v1104_v22, %v913_v23 }
 0x7b6   : > { %v1197_v25 = vpop.f32.mrf.mxu1 }
 0x7b7   : > { %v919_v26 = vadd.f32 %v914_v24, %v734_v3 }
 0x7b8   : > { %v916_v27 = vpop.f32.mrf.mxu1 }
 0x7b9   : > { %v922_v28 = vsel %vm480_vm1, %v919_v26, 0.0 }
 0x7ba   : > { %923 = vadd.xlane.f32.xlu0 %v922_v28  ;;  %v1198_v29 = vpop.f32.mrf.mxu1 }
 0x843   : > { %v924_v30 = vpop.xlane.xlu0 %923 }
 0x844   : > { %v925_v31 = vmul.f32 0.03125, %v924_v30 }
 0x846   : > { %v926_v32 = vsub.f32 %v919_v26, %v925_v31 }
 0x848   : > { %v927_v33 = vmul.f32 %v926_v32, %v926_v32 }
 0x84a   : > { %v928_v34 = vsel %vm480_vm1, %v927_v33, 0.0 }
 0x84b   : > { %929 = vadd.xlane.f32.xlu0 %v928_v34 }
 0x84c   : > { %1285 = shalt.err (!%p1282_p3)
}
 0x84d   : > { %s1286_s4 = scalar_lea.hbm %s981_s30, 128  ;;  %s1290_s23 = scalar_lea.hbm %s1683_s13, 256 }
 0x84e   : > { %p1287_p4 = scmp.ne.s32.totalorder %s981_s30, %s1286_s4  ;;  %p1291_p9 = scmp.lt.s32.totalorder %s981_s30, %s1683_s13 }
 0x84f   : > { %p1292_p10 = scmp.lt.s32.totalorder %s1290_s23, %s1286_s4 }
 0x850   : > { %p1288_p7 = pnand %p1287_p4, %p1479_p5 }
 0x851   : > { %p1293_p11 = por %p1292_p10, %p1291_p9 }
 0x852   : > { %p1289_p8 = pneg %p1288_p7 }
 0x854   : > { %p1294_p12 = pnand %p1293_p11, %p1289_p8 }
 0x856   : > { %1297 = shalt.err (!%p1294_p12)
}
 0x857   : > { %1200 = dma.vmem_to_hbm [thread:$0]  (%p1479_p5), %s984_s24, 128, %s981_s30, %s957_s15   ;;  %v1113_v39 = vld [vmem:[%s1680_s10] ss:$0 sm:$0xff] }
 0x858   : > { %v1114_v41 = vld [vmem:[%s1681_s11] ss:$0 sm:$0xff]  ;;  %s1700_s0 = sshll.u32 %s1531_s20, 3  ;;  %s1701_s30 = sshll.u32 %s1462_s29, 7 }
 0x859   : > { %s446_s21 = scalar_lea.vmem [#allocation2], %s1700_s0  ;;  %s968_s22 = scalar_lea.hbm %s1682_s12, %s1701_s30 }
 0x85a   : > { %s970_s16 = sshll.u32 %s446_s21, 4  ;;  %s952_s1 = scalar_lea.sflag [#allocation3], %s1531_s20  ;;  %s971_s16 = int_to_ptr.vmem [resolvable:$true] %s970_s16 }
 0x85b   : > { %s1298_s23 = scalar_lea.vmem %s971_s16, 128  ;;  %s1370_s2 = smov [#allocation2]  }
 0x85c   : > { %p1299_p13 = scmp.ne.s32.totalorder %s971_s16, %s1298_s23  ;;  %s1302_s3 = sshll.u32 %s1370_s2, 4  ;;  %s1303_s3 = int_to_ptr.vmem [resolvable:$false] %s1302_s3 }
 0x85d   : > { %s1304_s4 = scalar_lea.vmem %s1303_s3, 256  ;;  %p1305_p2 = scmp.lt.s32.totalorder %s971_s16, %s1303_s3 }
 0x85e   : > { %p1300_p0 = pnand %p1299_p13, %p1479_p5  ;;  %p1306_p3 = scmp.lt.s32.totalorder %s1304_s4, %s1298_s23 }
 0x860   : > { %p1301_p1 = pneg %p1300_p0  ;;  %p1307_p4 = por %p1306_p3, %p1305_p2 }
 0x862   : > { %p1308_p7 = pnand %p1307_p4, %p1301_p1 }
 0x8d4   : > { %v930_v35 = vpop.xlane.xlu0 %929 }
 0x8d5   : > { %v931_v36 = vmul.f32 0.03125, %v930_v35 }
 0x8d7   : > { %v932_v37 = vadd.f32 1e-06, %v931_v36 }
 0x8d9   : > { %1270 = vrsqrt.f32 %v932_v37 }
 0x8e6   : > { %v1271_v38 = vpop.eup %1270 }
 0x8e7   : > { %v934_v40 = vmul.f32 %v1271_v38, %v926_v32 }
 0x8e9   : > { %v941_v42 = vmul.f32 %v1113_v39, %v934_v40 }
 0x8eb   : > { %v948_v43 = vadd.f32 %v1114_v41, %v941_v42 }
 0x8ed   : > { %949 = vst.msk [vmem:[%s446_s21] sm:$0xff] %vm480_vm1, %v948_v43 }
 0x8ee   : > { %1311 = shalt.err (!%p1308_p7)
}
 0x8ef   : > { %s1312_s29 = scalar_lea.hbm %s968_s22, 128  ;;  %s1316_s0 = scalar_lea.hbm %s1682_s12, 256 }
 0x8f0   : > { %p1313_p8 = scmp.ne.s32.totalorder %s968_s22, %s1312_s29  ;;  %p1317_p11 = scmp.lt.s32.totalorder %s968_s22, %s1682_s12 }
 0x8f1   : > { %p1318_p12 = scmp.lt.s32.totalorder %s1316_s0, %s1312_s29 }
 0x8f2   : > { %p1314_p9 = pnand %p1313_p8, %p1479_p5 }
 0x8f3   : > { %p1319_p13 = por %p1318_p12, %p1317_p11 }
 0x8f4   : > { %p1315_p10 = pneg %p1314_p9 }
 0x8f6   : > { %p1320_p0 = pnand %p1319_p13, %p1315_p10 }
 0x8f8   : > { %1323 = shalt.err (!%p1320_p0)
}
 0x8f9   : > { %1199 = dma.vmem_to_hbm [thread:$0]  (%p1479_p5), %s971_s16, 128, %s968_s22, %s952_s1  }
 0x8fa PF: > { %p1210_p1 = scmp.ge.s32.totalorder %s1362_s28, 2  ;;  %s995_s24 = sand.u32 1, %s1350_s25  }
 0x8fb   : > { %s996_s15 = scalar_lea.sflag [#allocation3], %s995_s24 }
 0x8fc   : > { %p1204_p2 = pnand %p1210_p1, %p1483_p6 }
 0x8fe   : > { %p1205_p3 = pneg %p1204_p2 }
 0x900   : > { %1341 = dma.done.wait (%p1205_p3), %s996_s15, 128  }
 0x901   : > { %1343 = vsyncadd (%p1205_p3), %s996_s15, 4294967168  ;;  %s1005_s23 = scalar_lea.sflag [#allocation5], %s995_s24 }
 0x902   : > { %1345 = dma.done.wait (%p1205_p3), %s1005_s23, 128  }
 0x903   : > { %1347 = vsyncadd (%p1205_p3), %s1005_s23, 4294967168  ;;  %p27_p5 = scmp.ge.s32.totalorder %s1466_s14, 4   ;;  %s1702_s25 = smov %s1354_s26 }
 0x904   : > { %s1703_s26 = smov %s1358_s27  ;;  %s1704_s27 = smov %s1477_s17 }
 0x905   : > { %s1705_s28 = smov %s1466_s14  ;;  %29 = sbr.rel (!%p27_p5) target bundleno = 12 (0xc), region = 123 }
 0x90a   :  { %1010 = vsyncpa [#allocation3], 1 }
 0x90b   :  { %1012 = vsyncpa [#allocation3 + $0x1], 1 }
 0x90c   :  { %1013 = vsyncpa [#allocation5], 1 }
 0x90d   :  { %1015 = vsyncpa [#allocation5 + $0x1], 1 }

</bundles_post_ra>
